<compile_context>
chip_gen: v7x
topology: tpu7x:2x2x1
jax: 0.10.0
libtpu: 0.0.40
codegen_flags: <defaults>
</compile_context>

<pallas_src>
import functools

import jax
import jax.numpy as jnp
from jax.experimental import pallas as pl
from jax.experimental.pallas import tpu as pltpu

NOISE_STD = 0.1
# torchvision rgb_to_grayscale weights
_RW, _GW, _BW = 0.2989, 0.587, 0.114
_GOLDEN = 0x9E3779B9          # 2^32 / golden ratio


def _hash_u32(x):
    """lowbias32 integer finalizer (good avalanche). uint32 in / uint32 out."""
    x = x ^ (x >> 16)
    x = x * jnp.uint32(0x7FEB352D)
    x = x ^ (x >> 15)
    x = x * jnp.uint32(0x846CA68B)
    x = x ^ (x >> 16)
    return x


def _cos_2pi(t):
    """cos(2*pi*t) for t in [0, 1): quarter-period fold + degree-6 even poly.
    Max abs error ~1e-3 -- plenty for sigma=0.1 Gaussian noise."""
    w = jnp.abs(t - 0.5)                     # cos(2*pi*t) = -cos(2*pi*w)
    flip = w > 0.25
    y = jnp.where(flip, 0.5 - w, w)          # [0, 0.25]
    y2 = y * y
    p = jnp.float32(-85.45681)
    p = p * y2 + jnp.float32(64.939394)
    p = p * y2 - jnp.float32(19.739209)
    p = p * y2 + jnp.float32(1.0)            # ~cos(2*pi*y)
    return -jnp.where(flip, -p, p)


def _preproc_kernel(seed_ref, x_ref, o_ref, *, hw, tb, tr, lane, noise_std):
    # x_ref / o_ref: (TB, 3, TR, LANE) blocks; channel is a leading (untiled)
    # dim, so each per-channel slab is a dense, contiguous (TR, LANE) tile.
    r = x_ref[:, 0, :, :].astype(jnp.float32)
    g = x_ref[:, 1, :, :].astype(jnp.float32)
    b = x_ref[:, 2, :, :].astype(jnp.float32)
    gray = _RW * r + _GW * g + _BW * b                      # (TB, TR, LANE)

    # Deterministic, tiling-invariant noise keyed on the global (image, pixel)
    # index.  The *hw / *lane multiplies run on tiny iotas; only cheap
    # broadcast-adds touch the full tile.
    base = pl.program_id(0) * (tb * hw) + pl.program_id(1) * (tr * lane)
    img = jax.lax.broadcasted_iota(jnp.int32, (tb, 1, 1), 0) * hw
    row = jax.lax.broadcasted_iota(jnp.int32, (1, tr, 1), 1) * lane
    col = jax.lax.broadcasted_iota(jnp.int32, (1, 1, lane), 2)
    gid = (base + img) + (row + col)                        # (TB, TR, LANE)

    seed_u = seed_ref[0].astype(jnp.uint32) * jnp.uint32(_GOLDEN)
    h = _hash_u32(gid.astype(jnp.uint32) + seed_u)

    # 16-bit halves -> uniforms via the exponent bit-trick (no int->float
    # converts): bitcast(mantissa | 1.0f) lies in [1, 2).
    one_bits = jnp.uint32(0x3F800000)
    v1 = pltpu.bitcast(((h >> 16) << 7) | one_bits, jnp.float32)
    v2 = pltpu.bitcast(((h & jnp.uint32(0xFFFF)) << 7) | one_bits, jnp.float32)
    u1 = 2.0 - v1                                           # (0, 1]: log-safe
    u2 = v2 - 1.0                                           # [0, 1)
    z = jnp.sqrt(-2.0 * jnp.log(u1)) * _cos_2pi(u2)         # ~ N(0, 1)
    noisy = jnp.clip(gray + noise_std * z, 0.0, 1.0)

    o_ref[:, 0, :, :] = gray
    # TODO(synk): mediapipe FaceDetection has no Pallas/TPU equivalent; emit the
    # "no detections" mask (all zeros), matching FaceMaskExtractor's fallback.
    o_ref[:, 1, :, :] = jnp.zeros_like(gray)
    o_ref[:, 2, :, :] = noisy


def custom_input_preprocessor(rgb_images: jax.Array, seed: int = 0,
                              noise_std: float = NOISE_STD) -> jax.Array:
    """rgb_images: (B, 3, H, W) float, pixels in [0,1] -> (B, 3, H, W) f32."""
    B, C, H, W = rgb_images.shape
    assert C == 3, "expected RGB input"
    HW = H * W

    if not jnp.issubdtype(rgb_images.dtype, jnp.floating):
        rgb_images = rgb_images.astype(jnp.float32)   # e.g. u8 -> float once

    # Flatten the spatial dims into a (rows, LANE) layout so the kernel's
    # sublane/lane dims are dense; channel stays a leading dim.
    hw_pad = ((HW + 127) // 128) * 128
    x = rgb_images.reshape(B, 3, HW)
    if hw_pad != HW:
        # Uncommon path (HW not a multiple of 128): pad flat spatial axis.
        x = jnp.pad(x, ((0, 0), (0, 0), (0, hw_pad - HW)))

    lane = 128
    for cand in (512, 384, 256):
        if hw_pad % cand == 0 and hw_pad // cand >= 8:
            lane = cand
            break
    R = hw_pad // lane
    x = x.reshape(B, 3, R, lane)

    # ---- generation-aware tile selection (elementwise, HBM-bound) ----------
    vmem_cap = 64 * 1024 * 1024
    try:
        vmem_cap = getattr(pltpu.get_tpu_info(), "vmem_capacity_bytes", vmem_cap)
    except Exception:
        pass
    if vmem_cap >= 96 * 1024 * 1024:      # v5e / v6e: 128 MiB physical VMEM
        target_buf = 8 * 1024 * 1024
        vmem_limit = 64 * 1024 * 1024
    else:                                  # v7x: 64 MiB VMEM per TensorCore
        target_buf = 3 * 1024 * 1024
        vmem_limit = 32 * 1024 * 1024

    img_bytes = 3 * hw_pad * 4             # one image, f32
    if img_bytes <= target_buf:
        # Small / medium images: pack whole images per block.
        TR = R
        TB = max(1, min(B, target_buf // img_bytes))
        if pl.cdiv(B, TB) < 2:             # keep >= 2 grid steps (v7x: 2 TCs)
            if B > 1:
                TB = pl.cdiv(B, 2)
            elif R >= 16:
                TR = ((pl.cdiv(R, 2) + 7) // 8) * 8
    else:
        # Large images: one image per block, balanced row tiles (mult. of 8)
        # so the last grid step is not a tiny masked tail.
        TB = 1
        row_bytes = 3 * lane * 4
        tr_max = max(8, (target_buf // row_bytes) // 8 * 8)
        n_blk = pl.cdiv(R, tr_max)
        TR = min(R, ((pl.cdiv(R, n_blk) + 7) // 8) * 8)

    grid = (pl.cdiv(B, TB), pl.cdiv(R, TR))

    kernel = functools.partial(_preproc_kernel, hw=hw_pad, tb=TB, tr=TR,
                               lane=lane, noise_std=noise_std)
    seed_arr = jnp.array([seed], dtype=jnp.int32)

    grid_spec = pltpu.PrefetchScalarGridSpec(
        num_scalar_prefetch=1,
        grid=grid,
        in_specs=[pl.BlockSpec((TB, 3, TR, lane),
                               lambda bi, ri, seed_ref: (bi, 0, ri, 0))],
        out_specs=pl.BlockSpec((TB, 3, TR, lane),
                               lambda bi, ri, seed_ref: (bi, 0, ri, 0)),
    )

    out = pl.pallas_call(
        kernel,
        out_shape=jax.ShapeDtypeStruct((B, 3, R, lane), jnp.float32),
        grid_spec=grid_spec,
        compiler_params=pltpu.CompilerParams(
            # Images / spatial tiles are fully independent -> shard the grid
            # across both TensorCores on v7x; neutral on v5e/v6e.
            dimension_semantics=("parallel", "parallel"),
            vmem_limit_bytes=vmem_limit,
        ),
    )(seed_arr, x)

    out = out.reshape(B, 3, hw_pad)
    if hw_pad != HW:
        out = out[:, :, :HW]
    return out.reshape(B, 3, H, W)


if __name__ == "__main__":
    key = jax.random.PRNGKey(0)
    B, C, H, W = 2, 3, 16, 16
    rgb = jax.random.uniform(key, (B, C, H, W), dtype=jnp.float32)  # pixels in [0,1]

    out = custom_input_preprocessor(rgb, seed=0)
    jax.block_until_ready(out)

    # sanity checks on the non-stochastic parts
    gray_ref = _RW * rgb[:, 0] + _GW * rgb[:, 1] + _BW * rgb[:, 2]
    assert out.shape == (B, C, H, W)
    assert jnp.allclose(out[:, 0], gray_ref, atol=1e-5)
    assert jnp.all(out[:, 1] == 0.0)
    assert jnp.all(out[:, 2] >= 0.0) and jnp.all(out[:, 2] <= 1.0)
    # noise must actually have been applied
    assert not jnp.allclose(out[:, 2], jnp.clip(gray_ref, 0.0, 1.0), atol=1e-3)

    print("KERNEL_OK")
</pallas_src>

<mosaic_0001>
module attributes {stable_mosaic.version = 11 : i64} {
  func.func @_preproc_kernel(%arg0: i32, %arg1: i32, %arg2: memref<1xi32, #tpu.memory_space<smem>>, %arg3: memref<1x3x2x128xf32, #tpu.memory_space<vmem>>, %arg4: memref<1x3x2x128xf32, #tpu.memory_space<vmem>>) attributes {dimension_semantics = [#tpu.dimension_semantics<parallel>, #tpu.dimension_semantics<parallel>], iteration_bounds = array<i64: 2, 1>, scalar_prefetch = 1 : i64, scratch_operands = 0 : i64, tpu.core_type = #tpu.core_type<tc>, window_params = [{transform_indices = @transform_0, window_bounds = array<i64: 1, 3, 2, 128>}, {transform_indices = @transform_1, window_bounds = array<i64: 1, 3, 2, 128>}]} {
    %c0 = arith.constant 0 : index
    %c0_0 = arith.constant 0 : index
    %c0_1 = arith.constant 0 : index
    %c0_2 = arith.constant 0 : index
    %0 = vector.load %arg3[%c0, %c0_0, %c0_1, %c0_2] : memref<1x3x2x128xf32, #tpu.memory_space<vmem>>, vector<1x1x2x128xf32>
    %1 = vector.shape_cast %0 : vector<1x1x2x128xf32> to vector<1x2x128xf32>
    %c0_3 = arith.constant 0 : index
    %c1 = arith.constant 1 : index
    %c0_4 = arith.constant 0 : index
    %c0_5 = arith.constant 0 : index
    %2 = vector.load %arg3[%c0_3, %c1, %c0_4, %c0_5] : memref<1x3x2x128xf32, #tpu.memory_space<vmem>>, vector<1x1x2x128xf32>
    %3 = vector.shape_cast %2 : vector<1x1x2x128xf32> to vector<1x2x128xf32>
    %c0_6 = arith.constant 0 : index
    %c2 = arith.constant 2 : index
    %c0_7 = arith.constant 0 : index
    %c0_8 = arith.constant 0 : index
    %4 = vector.load %arg3[%c0_6, %c2, %c0_7, %c0_8] : memref<1x3x2x128xf32, #tpu.memory_space<vmem>>, vector<1x1x2x128xf32>
    %5 = vector.shape_cast %4 : vector<1x1x2x128xf32> to vector<1x2x128xf32>
    %cst = arith.constant 2.989000e-01 : f32
    %6 = vector.broadcast %cst : f32 to vector<1x2x128xf32>
    %7 = arith.mulf %6, %1 : vector<1x2x128xf32>
    %cst_9 = arith.constant 5.870000e-01 : f32
    %8 = vector.broadcast %cst_9 : f32 to vector<1x2x128xf32>
    %9 = arith.mulf %8, %3 : vector<1x2x128xf32>
    %10 = arith.addf %7, %9 : vector<1x2x128xf32>
    %cst_10 = arith.constant 1.140000e-01 : f32
    %11 = vector.broadcast %cst_10 : f32 to vector<1x2x128xf32>
    %12 = arith.mulf %11, %5 : vector<1x2x128xf32>
    %13 = arith.addf %10, %12 : vector<1x2x128xf32>
    %c256_i32 = arith.constant 256 : i32
    %14 = arith.muli %arg0, %c256_i32 : i32
    %c256_i32_11 = arith.constant 256 : i32
    %15 = arith.muli %arg1, %c256_i32_11 : i32
    %16 = arith.addi %14, %15 : i32
    %17 = tpu.iota {dimensions = array<i32: 0>} : vector<1x1x1xi32>
    %c256_i32_12 = arith.constant 256 : i32
    %18 = vector.broadcast %c256_i32_12 : i32 to vector<1x1x1xi32>
    %19 = arith.muli %17, %18 : vector<1x1x1xi32>
    %20 = tpu.iota {dimensions = array<i32: 1>} : vector<1x2x1xi32>
    %c128_i32 = arith.constant 128 : i32
    %21 = vector.broadcast %c128_i32 : i32 to vector<1x2x1xi32>
    %22 = arith.muli %20, %21 : vector<1x2x1xi32>
    %23 = tpu.iota {dimensions = array<i32: 2>} : vector<1x1x128xi32>
    %24 = vector.broadcast %16 : i32 to vector<1x1x1xi32>
    %25 = arith.addi %24, %19 : vector<1x1x1xi32>
    %26 = vector.broadcast %22 : vector<1x2x1xi32> to vector<1x2x128xi32>
    %27 = vector.broadcast %23 : vector<1x1x128xi32> to vector<1x2x128xi32>
    %28 = arith.addi %26, %27 : vector<1x2x128xi32>
    %29 = vector.broadcast %25 : vector<1x1x1xi32> to vector<1x2x128xi32>
    %30 = arith.addi %29, %28 : vector<1x2x128xi32>
    %c0_13 = arith.constant 0 : index
    %31 = memref.load %arg2[%c0_13] : memref<1xi32, #tpu.memory_space<smem>>
    %c-1640531527_i32 = arith.constant -1640531527 : i32
    %32 = arith.muli %31, %c-1640531527_i32 : i32
    %33 = vector.broadcast %32 : i32 to vector<1x2x128xi32>
    %34 = arith.addi %30, %33 : vector<1x2x128xi32>
    %c16_i32 = arith.constant 16 : i32
    %35 = vector.broadcast %c16_i32 : i32 to vector<1x2x128xi32>
    %36 = arith.shrui %34, %35 : vector<1x2x128xi32>
    %37 = arith.xori %34, %36 : vector<1x2x128xi32>
    %c2146121005_i32 = arith.constant 2146121005 : i32
    %38 = vector.broadcast %c2146121005_i32 : i32 to vector<1x2x128xi32>
    %39 = arith.muli %37, %38 : vector<1x2x128xi32>
    %c15_i32 = arith.constant 15 : i32
    %40 = vector.broadcast %c15_i32 : i32 to vector<1x2x128xi32>
    %41 = arith.shrui %39, %40 : vector<1x2x128xi32>
    %42 = arith.xori %39, %41 : vector<1x2x128xi32>
    %c-2073254261_i32 = arith.constant -2073254261 : i32
    %43 = vector.broadcast %c-2073254261_i32 : i32 to vector<1x2x128xi32>
    %44 = arith.muli %42, %43 : vector<1x2x128xi32>
    %c16_i32_14 = arith.constant 16 : i32
    %45 = vector.broadcast %c16_i32_14 : i32 to vector<1x2x128xi32>
    %46 = arith.shrui %44, %45 : vector<1x2x128xi32>
    %47 = arith.xori %44, %46 : vector<1x2x128xi32>
    %c16_i32_15 = arith.constant 16 : i32
    %48 = vector.broadcast %c16_i32_15 : i32 to vector<1x2x128xi32>
    %49 = arith.shrui %47, %48 : vector<1x2x128xi32>
    %c7_i32 = arith.constant 7 : i32
    %50 = vector.broadcast %c7_i32 : i32 to vector<1x2x128xi32>
    %51 = arith.shli %49, %50 : vector<1x2x128xi32>
    %c1065353216_i32 = arith.constant 1065353216 : i32
    %52 = vector.broadcast %c1065353216_i32 : i32 to vector<1x2x128xi32>
    %53 = arith.ori %51, %52 : vector<1x2x128xi32>
    %54 = tpu.bitcast %53 : vector<1x2x128xi32> -> vector<1x2x128xf32>
    %c65535_i32 = arith.constant 65535 : i32
    %55 = vector.broadcast %c65535_i32 : i32 to vector<1x2x128xi32>
    %56 = arith.andi %47, %55 : vector<1x2x128xi32>
    %c7_i32_16 = arith.constant 7 : i32
    %57 = vector.broadcast %c7_i32_16 : i32 to vector<1x2x128xi32>
    %58 = arith.shli %56, %57 : vector<1x2x128xi32>
    %c1065353216_i32_17 = arith.constant 1065353216 : i32
    %59 = vector.broadcast %c1065353216_i32_17 : i32 to vector<1x2x128xi32>
    %60 = arith.ori %58, %59 : vector<1x2x128xi32>
    %61 = tpu.bitcast %60 : vector<1x2x128xi32> -> vector<1x2x128xf32>
    %cst_18 = arith.constant 2.000000e+00 : f32
    %62 = vector.broadcast %cst_18 : f32 to vector<1x2x128xf32>
    %63 = arith.subf %62, %54 : vector<1x2x128xf32>
    %cst_19 = arith.constant 1.000000e+00 : f32
    %64 = vector.broadcast %cst_19 : f32 to vector<1x2x128xf32>
    %65 = arith.subf %61, %64 : vector<1x2x128xf32>
    %66 = math.log %63 : vector<1x2x128xf32>
    %cst_20 = arith.constant -2.000000e+00 : f32
    %67 = vector.broadcast %cst_20 : f32 to vector<1x2x128xf32>
    %68 = arith.mulf %67, %66 : vector<1x2x128xf32>
    %69 = math.sqrt %68 : vector<1x2x128xf32>
    %cst_21 = arith.constant 5.000000e-01 : f32
    %70 = vector.broadcast %cst_21 : f32 to vector<1x2x128xf32>
    %71 = arith.subf %65, %70 : vector<1x2x128xf32>
    %72 = math.absf %71 : vector<1x2x128xf32>
    %cst_22 = arith.constant 2.500000e-01 : f32
    %73 = vector.broadcast %cst_22 : f32 to vector<1x2x128xf32>
    %74 = arith.cmpf ogt, %72, %73 : vector<1x2x128xf32>
    %cst_23 = arith.constant 5.000000e-01 : f32
    %75 = vector.broadcast %cst_23 : f32 to vector<1x2x128xf32>
    %76 = arith.subf %75, %72 : vector<1x2x128xf32>
    %77 = arith.select %74, %76, %72 : vector<1x2x128xi1>, vector<1x2x128xf32>
    %78 = arith.mulf %77, %77 : vector<1x2x128xf32>
    %cst_24 = arith.constant -85.45681 : f32
    %79 = vector.broadcast %cst_24 : f32 to vector<1x2x128xf32>
    %80 = arith.mulf %79, %78 : vector<1x2x128xf32>
    %cst_25 = arith.constant 64.9393921 : f32
    %81 = vector.broadcast %cst_25 : f32 to vector<1x2x128xf32>
    %82 = arith.addf %80, %81 : vector<1x2x128xf32>
    %83 = arith.mulf %82, %78 : vector<1x2x128xf32>
    %cst_26 = arith.constant 19.7392082 : f32
    %84 = vector.broadcast %cst_26 : f32 to vector<1x2x128xf32>
    %85 = arith.subf %83, %84 : vector<1x2x128xf32>
    %86 = arith.mulf %85, %78 : vector<1x2x128xf32>
    %cst_27 = arith.constant 1.000000e+00 : f32
    %87 = vector.broadcast %cst_27 : f32 to vector<1x2x128xf32>
    %88 = arith.addf %86, %87 : vector<1x2x128xf32>
    %cst_28 = arith.constant 0.000000e+00 : f32
    %89 = vector.broadcast %cst_28 : f32 to vector<1x2x128xf32>
    %90 = arith.subf %89, %88 : vector<1x2x128xf32>
    %91 = arith.select %74, %90, %88 : vector<1x2x128xi1>, vector<1x2x128xf32>
    %cst_29 = arith.constant 0.000000e+00 : f32
    %92 = vector.broadcast %cst_29 : f32 to vector<1x2x128xf32>
    %93 = arith.subf %92, %91 : vector<1x2x128xf32>
    %94 = arith.mulf %69, %93 : vector<1x2x128xf32>
    %cst_30 = arith.constant 1.000000e-01 : f32
    %95 = vector.broadcast %cst_30 : f32 to vector<1x2x128xf32>
    %96 = arith.mulf %95, %94 : vector<1x2x128xf32>
    %97 = arith.addf %13, %96 : vector<1x2x128xf32>
    %cst_31 = arith.constant 0.000000e+00 : f32
    %cst_32 = arith.constant 1.000000e+00 : f32
    %98 = vector.broadcast %cst_31 : f32 to vector<1x2x128xf32>
    %99 = arith.maximumf %98, %97 : vector<1x2x128xf32>
    %100 = vector.broadcast %cst_32 : f32 to vector<1x2x128xf32>
    %101 = arith.minimumf %100, %99 : vector<1x2x128xf32>
    %c0_33 = arith.constant 0 : index
    %c0_34 = arith.constant 0 : index
    %c0_35 = arith.constant 0 : index
    %c0_36 = arith.constant 0 : index
    %102 = vector.load %arg4[%c0_33, %c0_34, %c0_35, %c0_36] : memref<1x3x2x128xf32, #tpu.memory_space<vmem>>, vector<1x1x2x128xf32>
    %103 = vector.shape_cast %102 : vector<1x1x2x128xf32> to vector<1x2x128xf32>
    %104 = vector.shape_cast %13 : vector<1x2x128xf32> to vector<1x1x2x128xf32>
    tpu.vector_store %arg4[%c0_33, %c0_34, %c0_35, %c0_36], %104 {strides = array<i32>} : memref<1x3x2x128xf32, #tpu.memory_space<vmem>>, vector<1x1x2x128xf32>,
    %cst_37 = arith.constant 0.000000e+00 : f32
    %105 = vector.broadcast %cst_37 : f32 to vector<1x2x128xf32>
    %c0_38 = arith.constant 0 : index
    %c1_39 = arith.constant 1 : index
    %c0_40 = arith.constant 0 : index
    %c0_41 = arith.constant 0 : index
    %106 = vector.load %arg4[%c0_38, %c1_39, %c0_40, %c0_41] : memref<1x3x2x128xf32, #tpu.memory_space<vmem>>, vector<1x1x2x128xf32>
    %107 = vector.shape_cast %106 : vector<1x1x2x128xf32> to vector<1x2x128xf32>
    %108 = vector.shape_cast %105 : vector<1x2x128xf32> to vector<1x1x2x128xf32>
    tpu.vector_store %arg4[%c0_38, %c1_39, %c0_40, %c0_41], %108 {strides = array<i32>} : memref<1x3x2x128xf32, #tpu.memory_space<vmem>>, vector<1x1x2x128xf32>,
    %c0_42 = arith.constant 0 : index
    %c2_43 = arith.constant 2 : index
    %c0_44 = arith.constant 0 : index
    %c0_45 = arith.constant 0 : index
    %109 = vector.load %arg4[%c0_42, %c2_43, %c0_44, %c0_45] : memref<1x3x2x128xf32, #tpu.memory_space<vmem>>, vector<1x1x2x128xf32>
    %110 = vector.shape_cast %109 : vector<1x1x2x128xf32> to vector<1x2x128xf32>
    %111 = vector.shape_cast %101 : vector<1x2x128xf32> to vector<1x1x2x128xf32>
    tpu.vector_store %arg4[%c0_42, %c2_43, %c0_44, %c0_45], %111 {strides = array<i32>} : memref<1x3x2x128xf32, #tpu.memory_space<vmem>>, vector<1x1x2x128xf32>,
    return
  }
  func.func @transform_0(%arg0: i32, %arg1: i32, %arg2: memref<1xi32, #tpu.memory_space<smem>>) -> (i32, i32, i32, i32) {
    %c0_i32 = arith.constant 0 : i32
    %c0_i32_0 = arith.constant 0 : i32
    %c0_i32_1 = arith.constant 0 : i32
    return %arg0, %c0_i32, %arg1, %c0_i32_0 : i32, i32, i32, i32
  }
  func.func @transform_1(%arg0: i32, %arg1: i32, %arg2: memref<1xi32, #tpu.memory_space<smem>>) -> (i32, i32, i32, i32) {
    %c0_i32 = arith.constant 0 : i32
    %c0_i32_0 = arith.constant 0 : i32
    %c0_i32_1 = arith.constant 0 : i32
    return %arg0, %c0_i32, %arg1, %c0_i32_0 : i32, i32, i32, i32
  }
}

</mosaic_0001>

<bundles_post_ra>
// kernel: tpu_custom_call.1
= control target key start
LH: loop header
LB: loop body
LE: loop exit
PB: predicated region body
PF: predicated region fallthrough
CT: control target
= control target key end

     0   :  { %s745_s0 = inlined_call_operand.<no memory space> [shape: s32[1], index: 0, kind: input, shape index: {}]   ;;  %s746_s1 = inlined_call_operand.hbm [shape: f32[2,3,2,128], index: 1, kind: input, shape index: {}]   ;;  %s747_s2 = inlined_call_operand.hbm [shape: f32[2,3,2,128], index: 2, kind: output, shape index: {}]  }
   0x1   :  { %7 = sst [smem:[#allocation3]] %s745_s0 }
   0x2   :  { %8 = vsyncpa [#allocation5], 0 }
   0x3   :  { %10 = vsyncpa [#allocation5 + $0x1], 0 }
   0x4   :  { %11 = vsyncpa [#allocation6], 0 }
   0x5   :  { %13 = vsyncpa [#allocation6 + $0x1], 0  ;;  %s563_s11 = smov 0   ;;  %s565_s12 = smov 0  }
   0x6   :  { %s567_s13 = smov 0   ;;  %s569_s14 = smov 0  }
   0x7   :  { %s571_s15 = smov 0   ;;  %s573_s16 = smov 0  }
   0x8 LB: > { %s332_s0 = sadd.s32 4294967295, %s536_s16   ;;  %s333_s17 = sadd.s32 4294967294, %s536_s16   ;;  %s536_s16 = sphi %s573_s16, %s19_s16   ;;  %s532_s15 = sphi %s571_s15, %s762_s15   ;;  %s528_s14 = sphi %s569_s14, %s761_s14   ;;  %s524_s13 = sphi %s567_s13, %s760_s13   ;;  %s520_s12 = sphi %s565_s12, %s759_s12   ;;  %s516_s11 = sphi %s563_s11, %s758_s11  }
   0x9   : > { %s31_s18 = sadd.s32 1, %s532_s15  ;;  %s40_s19 = sadd.s32 1, %s524_s13 }
   0xa   : > { %p33_p0 = scmp.ge.s32.totalorder %s31_s18, 2  ;;  %p47_p1 = scmp.ne.s32.totalorder %s524_s13, %s520_s12 }
   0xb   : > { %p48_p2 = scmp.eq.s32.totalorder %s536_s16, 0  ;;  %p53_p3 = scmp.ne.s32.totalorder %s520_s12, %s516_s11 }
   0xc   : > { %s764_s18 = smov (%p33_p0, %s31_s18), 0  ;;  %p54_p5 = scmp.eq.s32.totalorder %s332_s0, 0 }
   0xd   : > { %p604_p4 = por %p48_p2, %p47_p1  ;;  %s35_s21 = ssub.s32 %s532_s15, %s764_s18 }
   0xe   : > { %p79_p6 = scmp.eq.s32.totalorder %s332_s0, 1  ;;  %p38_p7 = scmp.eq.s32.totalorder %s35_s21, 0 }
   0xf   : > { %p610_p8 = por %p54_p5, %p53_p3  ;;  %p85_p10 = scmp.eq.s32.totalorder %s333_s17, 1 }
  0x10   : > { %p614_p9 = por %p79_p6, %p47_p1  ;;  %p365_p13 = scmp.lt.s32.totalorder %s536_s16, 2 }
  0x11   : > { %s619_s24 = scalar_select %p38_p7, %s524_s13, %s40_s19  }
  0x12   : > { %s751_s23 = scalar_select %p614_p9, 1, 0 }
  0x13   : > { %p621_p11 = por %p85_p10, %p53_p3  ;;  %s105_s26 = sand.u32 1, %s524_s13  }
  0x14   : > { %s349_s27 = smul.u32 6, %s105_s26  ;;  %p631_p0 = pnand %p365_p13, %p604_p4 }
  0x15   : > { %s752_s25 = scalar_select %p621_p11, 1, 0 }
  0x16   : > { %s350_s28 = smul.u32 96, %s532_s15  ;;  %s109_s5 = scalar_lea.vmem [#allocation4], %s349_s27 }
  0x17   : > { %s117_s6 = sshll.u32 %s109_s5, 4  ;;  %s643_s7 = scalar_lea.sflag [#allocation5], %s105_s26  ;;  %s640_s6 = int_to_ptr.vmem [resolvable:$true] %s117_s6 }
  0x18   : > { %s638_s4 = scalar_lea.hbm %s746_s1, %s350_s28  ;;  %p426_p3 = pneg %p631_p0 }
  0x19   : > { %s424_s8 = scalar_lea.hbm %s638_s4, 96  ;;  %s429_s0 = scalar_lea.hbm %s746_s1, 192 }
  0x1a   : > { %p425_p2 = scmp.ne.s32.totalorder %s638_s4, %s424_s8  ;;  %p430_p6 = scmp.lt.u32.totalorder %s638_s4, %s746_s1 }
  0x1b   : > { %p431_p7 = scmp.lt.u32.totalorder %s429_s0, %s424_s8  ;;  %p433_p13 = scmp.lt.u32.totalorder %s424_s8, %s638_s4 }
  0x1c   : > { %p427_p4 = pnand %p426_p3, %p425_p2 }
  0x1d   : > { %p432_p10 = por %p431_p7, %p430_p6 }
  0x1e   : > { %p428_p5 = pneg %p427_p4 }
  0x1f   : > { %p434_p12 = por %p433_p13, %p432_p10 }
  0x21   : > { %p435_p1 = pnand %p434_p12, %p428_p5 }
  0x23   : > { %438 = shalt.err (!%p435_p1)
}
  0x24   : > { %s439_s20 = scalar_lea.vmem %s640_s6, 96  ;;  %s538_s21 = smov [#allocation4]  }
  0x25   : > { %p440_p2 = scmp.ne.s32.totalorder %s640_s6, %s439_s20  ;;  %s444_s26 = sshll.u32 %s538_s21, 4  ;;  %s445_s26 = int_to_ptr.vmem [resolvable:$false] %s444_s26 }
  0x26   : > { %s446_s27 = scalar_lea.vmem %s445_s26, 192  ;;  %p447_p9 = scmp.lt.s32.totalorder %s640_s6, %s445_s26 }
  0x27   : > { %p442_p4 = pnand %p440_p2, %p426_p3  ;;  %p448_p6 = scmp.lt.s32.totalorder %s446_s27, %s439_s20 }
  0x29   : > { %p443_p11 = pneg %p442_p4  ;;  %p449_p7 = por %p448_p6, %p447_p9 }
  0x2b   : > { %p450_p10 = pnand %p449_p7, %p443_p11 }
  0x2d   : > { %453 = shalt.err (!%p450_p10)
}
  0x2e   : > { %s539_s28 = smov 32   ;;  %s540_s30 = smov 2  }
  0x2f   : > { %360 = dma.hbm_to_vmem [thread:$0]  (!%p631_p0), %s638_s4, 96, %s640_s6, %s643_s7, %s539_s28, %s539_s28, %s540_s30  }
  0x30   : > { %p125_p12 = scmp.lt.s32.totalorder %s536_s16, 3  ;;  %p754_p1 = scmp.ge.s32.totalorder %s536_s16, 1 }
  0x32   : > { %p126_p3 = pnand %p754_p1, %p125_p12 }
  0x33   : > { %s675_s3 = sand.u32 (!%p126_p3), 1, %s520_s12  }
  0x34   : > { %129 = sbr.rel (%p126_p3) target bundleno = 151 (0x97), region = 24  ;;  %s132_s8 = scalar_lea.sflag (!%p126_p3), [#allocation5], %s675_s3 }
  0x35   : > { %s351_s5 = smul.u32 (!%p126_p3), 6, %s675_s3 }
  0x37   : > { %s135_s9 = scalar_lea.vmem (!%p126_p3), [#allocation4], %s351_s5 }
  0x3b   : > { %507 = dma.done.wait (%p610_p8), %s132_s8, 96  }
  0x3c   : > { %509 = vsyncadd (%p610_p8), %s132_s8, 4294967200  ;;  %v167_v0 = vlaneseq  ;;  %s175_s29 = sld [smem:[#allocation3]]  ;;  %s683_s4 = scalar_lea.vmem [#allocation7], %s351_s5  ;;  %v541_v1 = vmov 0.0   ;;  %v154_v7 = vld [vmem:[%s135_s9] sm:$0x3] }
  0x3d   : > { %344 = vst [vmem:[%s683_s4 + $0x2] sm:$0x3] %v541_v1  ;;  %s340_s6 = sshll.u32 %s528_s14, 8  ;;  %v338_v8 = vld [vmem:[%s135_s9 + $0x2] sm:$0x3]  ;;  %s247_s22 = sshll.u32 %s683_s4, 4  ;;  %s690_s22 = int_to_ptr.vmem [resolvable:$true] %s247_s22 }
  0x3e   : > { %v168_v2 = vshrl.u32 %v167_v0, 7  ;;  %v171_v3 = vand.u32 127, %v167_v0  ;;  %v172_v5 = vstv %s340_s6  ;;  %v339_v10 = vld [vmem:[%s135_s9 + $0x4] sm:$0x3]  ;;  %v159_v11 = vmul.f32 0.2989, %v154_v7 }
  0x3f   : > { %v160_v12 = vmul.f32 0.587, %v338_v8  ;;  %v162_v14 = vmul.f32 0.114, %v339_v10  ;;  %s352_s10 = smul.u32 96, %s528_s14  ;;  %s233_s20 = scalar_lea.sflag [#allocation6], %s675_s3 }
  0x40   : > { %v169_v4 = vmul.u32 128, %v168_v2  ;;  %s454_s21 = scalar_lea.vmem %s690_s22, 96  ;;  %p755_p9 = scmp.ne.s32.totalorder %s751_s23, 0 }
  0x41   : > { %v161_v16 = vadd.f32 %v160_v12, %v159_v11  ;;  %s695_s19 = scalar_lea.hbm %s747_s2, %s352_s10  ;;  %p455_p8 = scmp.ne.s32.totalorder %s690_s22, %s454_s21 }
  0x42   : > { %v173_v6 = vadd.s32 %v171_v3, %v169_v4  ;;  %s176_s7 = smul.u32 2654435769, %s175_s29  ;;  %s542_s14 = smov [#allocation7]  }
  0x43   : > { %v163_v18 = vadd.f32 %v162_v14, %v161_v16  ;;  %p456_p11 = pnand %p455_p8, %p755_p9  ;;  %s458_s26 = sshll.u32 %s542_s14, 4  ;;  %s459_s26 = int_to_ptr.vmem [resolvable:$false] %s458_s26 }
  0x44   : > { %v174_v9 = vadd.s32 %v173_v6, %v172_v5  ;;  %v177_v13 = vstv %s176_s7  ;;  %s460_s27 = scalar_lea.vmem %s459_s26, 192  ;;  %p461_p5 = scmp.lt.s32.totalorder %s690_s22, %s459_s26 }
  0x45   : > { %227 = vst [vmem:[%s683_s4] sm:$0x3] %v163_v18  ;;  %p457_p0 = pneg %p456_p11  ;;  %p462_p13 = scmp.lt.s32.totalorder %s460_s27, %s454_s21 }
  0x46   : > { %v178_v15 = vadd.s32 %v177_v13, %v174_v9 }
  0x47   : > { %p463_p2 = por %p462_p13, %p461_p5 }
  0x48   : > { %v179_v17 = vshrl.u32 %v178_v15, 16 }
  0x49   : > { %p464_p4 = pnand %p463_p2, %p457_p0 }
  0x4a   : > { %v180_v19 = vxor.u32 %v179_v17, %v178_v15 }
  0x4c   : > { %v181_v20 = vmul.u32 2146121005, %v180_v19 }
  0x4e   : > { %v182_v21 = vshrl.u32 %v181_v20, 15 }
  0x50   : > { %v183_v22 = vxor.u32 %v182_v21, %v181_v20 }
  0x52   : > { %v184_v23 = vmul.u32 2221713035, %v183_v22 }
  0x54   : > { %v185_v24 = vshrl.u32 %v184_v23, 16 }
  0x56   : > { %v186_v25 = vxor.u32 %v185_v24, %v184_v23 }
  0x58   : > { %v187_v26 = vshrl.u32 %v186_v25, 16  ;;  %v191_v27 = vand.u32 65535, %v186_v25 }
  0x5a   : > { %v188_v28 = vshll.u32 %v187_v26, 7  ;;  %v192_v29 = vshll.u32 %v191_v27, 7 }
  0x5c   : > { %v189_v30 = vor.u32 1065353216, %v188_v28  ;;  %v193_v31 = vor.u32 1065353216, %v192_v29 }
  0x5e   : > { %v195_v32 = vsub.f32 2.0, %v189_v30  ;;  %v341_v33 = vadd.f32 -1.0, %v193_v31 }
  0x60   : > { %420 = vlog2.f32 %v195_v32  ;;  %v342_v34 = vadd.f32 -0.5, %v341_v33 }
  0x62   : > { %v208_v35 = vand.u32 2147483647, %v342_v34 }
  0x64   : > { %vm209_vm0 = vcmp.gt.f32.partialorder %v208_v35, 0.25  ;;  %v210_v36 = vsub.f32 0.5, %v208_v35 }
  0x66   : > { %v211_v37 = vsel %vm209_vm0, %v210_v36, %v208_v35 }
  0x67   : > { %v212_v38 = vmul.f32 %v211_v37, %v211_v37 }
  0x69   : > { %v213_v39 = vmul.f32 -85.45681, %v212_v38 }
  0x6a   : > { %v421_v40 = vpop.eup %420 }
  0x6b   : > { %v198_v41 = vmul.f32 0.6931472, %v421_v40  ;;  %v214_v42 = vadd.f32 64.93939, %v213_v39 }
  0x6d   : > { %v199_v43 = vmul.f32 -2.0, %v198_v41  ;;  %v215_v44 = vmul.f32 %v214_v42, %v212_v38 }
  0x6f   : > { %422 = vrsqrt.f32 %v199_v43  ;;  %v343_v45 = vadd.f32 -19.739208, %v215_v44  ;;  %vm202_vm1 = vcmp.eq.f32.partialorder %v199_v43, inf  ;;  %v205_v51 = vand.u32 2147483648, %v199_v43 }
  0x70   : > { %vm204_vm2 = vcmp.eq.f32.partialorder %v199_v43, 0.0 }
  0x71   : > { %v217_v46 = vmul.f32 %v343_v45, %v212_v38 }
  0x73   : > { %v218_v47 = vadd.f32 1.0, %v217_v46 }
  0x75   : > { %v219_v48 = vsub.f32 0.0, %v218_v47 }
  0x77   : > { %v220_v49 = vsel %vm209_vm0, %v219_v48, %v218_v47 }
  0x78   : > { %v221_v53 = vsub.f32 0.0, %v220_v49 }
  0x79   : > { %v423_v50 = vpop.eup %422 }
  0x7a   : > { %v201_v52 = vmul.f32 %v423_v50, %v199_v43 }
  0x7c   : > { %v203_v54 = vsel %vm202_vm1, %v199_v43, %v201_v52 }
  0x7d   : > { %v206_v55 = vsel %vm204_vm2, %v205_v51, %v203_v54 }
  0x7e   : > { %v222_v56 = vmul.f32 %v221_v53, %v206_v55 }
  0x80   : > { %v223_v57 = vmul.f32 0.1, %v222_v56 }
  0x82   : > { %v224_v58 = vadd.f32 %v223_v57, %v163_v18 }
  0x84   : > { %v225_v59 = vmax.f32 %v224_v58, 0.0 }
  0x86   : > { %v226_v60 = vmin.f32 %v225_v59, 1.0 }
  0x88   : > { %345 = vst [vmem:[%s683_s4 + $0x4] sm:$0x3] %v226_v60 }
  0x89   : > { %467 = shalt.err (!%p464_p4)
}
  0x8a   : > { %s468_s28 = scalar_lea.hbm %s695_s19, 96  ;;  %s472_s8 = scalar_lea.hbm %s747_s2, 192 }
  0x8b   : > { %p469_p6 = scmp.ne.s32.totalorder %s695_s19, %s468_s28  ;;  %p473_p12 = scmp.lt.u32.totalorder %s695_s19, %s747_s2 }
  0x8c   : > { %p474_p1 = scmp.lt.u32.totalorder %s472_s8, %s468_s28  ;;  %p476_p8 = scmp.lt.u32.totalorder %s468_s28, %s695_s19 }
  0x8d   : > { %p470_p7 = pnand %p469_p6, %p755_p9 }
  0x8e   : > { %p475_p3 = por %p474_p1, %p473_p12 }
  0x8f   : > { %p471_p10 = pneg %p470_p7 }
  0x90   : > { %p477_p11 = por %p476_p8, %p475_p3 }
  0x92   : > { %p478_p0 = pnand %p477_p11, %p471_p10 }
  0x94   : > { %481 = shalt.err (!%p478_p0)
}
  0x95   : > { %s543_s4 = smov 32   ;;  %s544_s6 = smov 2  }
  0x96   : > { %355 = dma.vmem_to_hbm [thread:$0]  (%p755_p9), %s690_s22, 96, %s695_s19, %s233_s20, %s543_s4, %s543_s4, %s544_s6  }
  0x97 PF: > { %s262_s7 = sand.u32 1, %s516_s11   ;;  %p756_p5 = scmp.ne.s32.totalorder %s752_s25, 0 }
  0x98   : > { %p757_p13 = scmp.ge.s32.totalorder %s536_s16, 2  ;;  %s263_s10 = scalar_lea.sflag [#allocation6], %s262_s7 }
  0x9a   : > { %p362_p2 = pnand %p757_p13, %p756_p5 }
  0x9c   : > { %511 = dma.done.wait (!%p362_p2), %s263_s10, 96  }
  0x9d   : > { %513 = vsyncadd (!%p362_p2), %s263_s10, 4294967200  ;;  %s19_s16 = sadd.s32 1, %s536_s16   ;;  %s758_s11 = smov %s520_s12 }
  0x9e   : > { %p16_p4 = scmp.ge.s32.totalorder %s19_s16, 4   ;;  %s759_s12 = smov %s524_s13 }
  0x9f   : > { %s760_s13 = smov %s619_s24  ;;  %s761_s14 = smov %s532_s15 }
  0xa0   : > { %s762_s15 = smov %s764_s18  ;;  %18 = sbr.rel (!%p16_p4) target bundleno = 8 (0x8), region = 73 }
  0xa7   :  { %268 = vsyncpa [#allocation5], 1 }
  0xa8   :  { %270 = vsyncpa [#allocation5 + $0x1], 1 }
  0xa9   :  { %271 = vsyncpa [#allocation6], 1 }
  0xaa   :  { %273 = vsyncpa [#allocation6 + $0x1], 1 }

</bundles_post_ra>
